<compile_context>
chip_gen: v5e
topology: v5e:2x2
jax: 0.10.0
libtpu: 0.0.40
codegen_flags: <defaults>
</compile_context>

<pallas_src>
import functools

import jax
import jax.numpy as jnp
from jax import lax
from jax.experimental import pallas as pl
from jax.experimental.pallas import tpu as pltpu


# ----------------------------- fused LayerNorm([N, D]) kernel ----------------------------------
def _prenorm_kernel(x_ref, g_ref, b_ref, o_ref, *, n_elems, eps):
    # x_ref: (1, N, D)   g_ref/b_ref: (N, D)   o_ref: (1, N, D)
    x = x_ref[0].astype(jnp.float32)                     # whole sample tile lives in VMEM
    mean = jnp.sum(x) * (1.0 / n_elems)                  # scalar mean over all N*D elements
    d = x - mean
    var = jnp.sum(d * d) * (1.0 / n_elems)               # two-pass biased variance (stable)
    inv = lax.rsqrt(var + eps)                           # EUP rsqrt (free slot vs VPU)
    o_ref[0] = (d * inv * g_ref[...] + b_ref[...]).astype(o_ref.dtype)


def layernorm_2d(x, gamma, beta, eps=1e-5):
    """LayerNorm over the last TWO dims.  x: (B, N, D); gamma/beta: (N, D)."""
    B, N, D = x.shape
    kern = functools.partial(_prenorm_kernel, n_elems=float(N * D), eps=eps)
    return pl.pallas_call(
        kern,
        out_shape=jax.ShapeDtypeStruct(x.shape, x.dtype),
        grid=(B,),
        in_specs=[pl.BlockSpec((1, N, D), lambda b: (b, 0, 0)),
                  pl.BlockSpec((N, D), lambda b: (0, 0)),
                  pl.BlockSpec((N, D), lambda b: (0, 0))],
        out_specs=pl.BlockSpec((1, N, D), lambda b: (b, 0, 0)),
        compiler_params=pltpu.CompilerParams(dimension_semantics=("parallel",)),
    )(x, gamma, beta)


# ----------------------------- PreNorm.forward --------------------------------------------------
def prenorm_forward(x, params, fn=None, eps=1e-5):
    """params: dict {seq_len: (gamma, beta)} with gamma/beta of shape (seq_len, 50)."""
    N = x.shape[1]
    if N not in params:
        raise ValueError(f"unsupported sequence length {N}; expected one of {sorted(params)}")
    gamma, beta = params[N]
    y = layernorm_2d(x, gamma, beta, eps=eps)
    # TODO(synk): self.fn is an arbitrary wrapped module (attention/MLP) not defined by this
    # spec; it is applied as identity here (pass a callable via `fn=` to compose).
    return fn(y) if fn is not None else y


# ----------------------------- pure-JAX reference (correctness check) ---------------------------
def _ref_forward(x, gamma, beta, eps=1e-5):
    mean = jnp.mean(x, axis=(1, 2), keepdims=True)
    var = jnp.mean(jnp.square(x - mean), axis=(1, 2), keepdims=True)
    return (x - mean) / jnp.sqrt(var + eps) * gamma + beta


if __name__ == "__main__":
    key = jax.random.PRNGKey(0)
    kx, kg, kb = jax.random.split(key, 3)

    B, N, D = 2, 196, 50                     # module fixes D=50; N must be 3136 / 784 / 196
    x = jax.random.normal(kx, (B, N, D), jnp.float32)

    # A fresh nn.LayerNorm has weight=1, bias=0; use randomized affine params here so the
    # elementwise-affine path is actually exercised by the check (deterministic via key 0).
    gamma = 1.0 + 0.1 * jax.random.normal(kg, (N, D), jnp.float32)
    beta = 0.1 * jax.random.normal(kb, (N, D), jnp.float32)
    params = {N: (gamma, beta)}

    out = jax.block_until_ready(prenorm_forward(x, params))
    ref = jax.block_until_ready(_ref_forward(x, gamma, beta))

    assert out.shape == (B, N, D), out.shape
    assert jnp.allclose(out, ref, rtol=1e-4, atol=1e-4), float(jnp.max(jnp.abs(out - ref)))
    print("KERNEL_OK")
</pallas_src>

<mosaic_0001>
module attributes {stable_mosaic.version = 11 : i64} {
  func.func @_prenorm_kernel(%arg0: i32, %arg1: memref<1x196x50xf32, #tpu.memory_space<vmem>>, %arg2: memref<196x50xf32, #tpu.memory_space<vmem>>, %arg3: memref<196x50xf32, #tpu.memory_space<vmem>>, %arg4: memref<1x196x50xf32, #tpu.memory_space<vmem>>) attributes {dimension_semantics = [#tpu.dimension_semantics<parallel>], iteration_bounds = array<i64: 2>, scalar_prefetch = 0 : i64, scratch_operands = 0 : i64, tpu.core_type = #tpu.core_type<tc>, window_params = [{transform_indices = @transform_0, window_bounds = array<i64: 1, 196, 50>}, {pipeline_mode = #tpu.pipeline_mode<synchronous>, transform_indices = @transform_1, window_bounds = array<i64: 196, 50>}, {pipeline_mode = #tpu.pipeline_mode<synchronous>, transform_indices = @transform_2, window_bounds = array<i64: 196, 50>}, {transform_indices = @transform_3, window_bounds = array<i64: 1, 196, 50>}]} {
    %c0 = arith.constant 0 : index
    %c0_0 = arith.constant 0 : index
    %c0_1 = arith.constant 0 : index
    %0 = vector.load %arg1[%c0, %c0_0, %c0_1] : memref<1x196x50xf32, #tpu.memory_space<vmem>>, vector<1x196x50xf32>
    %1 = vector.shape_cast %0 : vector<1x196x50xf32> to vector<196x50xf32>
    %2 = vector.shape_cast %1 : vector<196x50xf32> to vector<1x196x50xf32>
    %cst = arith.constant dense<0.000000e+00> : vector<1xf32>
    %3 = vector.multi_reduction <add>, %2, %cst [1, 2] : vector<1x196x50xf32> to vector<1xf32>
    %4 = vector.shape_cast %3 : vector<1xf32> to vector<1x1x1xf32>
    %5 = vector.extract %4[0, 0, 0] : f32 from vector<1x1x1xf32>
    %cst_2 = arith.constant 1.02040816E-4 : f32
    %6 = arith.mulf %5, %cst_2 : f32
    %7 = vector.broadcast %6 : f32 to vector<196x50xf32>
    %8 = arith.subf %1, %7 : vector<196x50xf32>
    %9 = arith.mulf %8, %8 : vector<196x50xf32>
    %10 = vector.shape_cast %9 : vector<196x50xf32> to vector<1x196x50xf32>
    %cst_3 = arith.constant dense<0.000000e+00> : vector<1xf32>
    %11 = vector.multi_reduction <add>, %10, %cst_3 [1, 2] : vector<1x196x50xf32> to vector<1xf32>
    %12 = vector.shape_cast %11 : vector<1xf32> to vector<1x1x1xf32>
    %13 = vector.extract %12[0, 0, 0] : f32 from vector<1x1x1xf32>
    %cst_4 = arith.constant 1.02040816E-4 : f32
    %14 = arith.mulf %13, %cst_4 : f32
    %cst_5 = arith.constant 9.99999974E-6 : f32
    %15 = arith.addf %14, %cst_5 : f32
    %16 = math.rsqrt %15 : f32
    %17 = vector.broadcast %16 : f32 to vector<196x50xf32>
    %18 = arith.mulf %8, %17 : vector<196x50xf32>
    %c0_6 = arith.constant 0 : index
    %c0_7 = arith.constant 0 : index
    %19 = vector.load %arg2[%c0_6, %c0_7] : memref<196x50xf32, #tpu.memory_space<vmem>>, vector<196x50xf32>
    %20 = arith.mulf %18, %19 : vector<196x50xf32>
    %c0_8 = arith.constant 0 : index
    %c0_9 = arith.constant 0 : index
    %21 = vector.load %arg3[%c0_8, %c0_9] : memref<196x50xf32, #tpu.memory_space<vmem>>, vector<196x50xf32>
    %22 = arith.addf %20, %21 : vector<196x50xf32>
    %c0_10 = arith.constant 0 : index
    %c0_11 = arith.constant 0 : index
    %c0_12 = arith.constant 0 : index
    %23 = vector.load %arg4[%c0_10, %c0_11, %c0_12] : memref<1x196x50xf32, #tpu.memory_space<vmem>>, vector<1x196x50xf32>
    %24 = vector.shape_cast %23 : vector<1x196x50xf32> to vector<196x50xf32>
    %25 = vector.shape_cast %22 : vector<196x50xf32> to vector<1x196x50xf32>
    tpu.vector_store %arg4[%c0_10, %c0_11, %c0_12], %25 {strides = array<i32>} : memref<1x196x50xf32, #tpu.memory_space<vmem>>, vector<1x196x50xf32>,
    return
  }
  func.func @transform_0(%arg0: i32) -> (i32, i32, i32) {
    %c0_i32 = arith.constant 0 : i32
    %c0_i32_0 = arith.constant 0 : i32
    %c0_i32_1 = arith.constant 0 : i32
    return %arg0, %c0_i32, %c0_i32_0 : i32, i32, i32
  }
  func.func @transform_1(%arg0: i32) -> (i32, i32) {
    %c0_i32 = arith.constant 0 : i32
    %c0_i32_0 = arith.constant 0 : i32
    %c0_i32_1 = arith.constant 0 : i32
    return %c0_i32, %c0_i32_0 : i32, i32
  }
  func.func @transform_2(%arg0: i32) -> (i32, i32) {
    %c0_i32 = arith.constant 0 : i32
    %c0_i32_0 = arith.constant 0 : i32
    %c0_i32_1 = arith.constant 0 : i32
    return %c0_i32, %c0_i32_0 : i32, i32
  }
  func.func @transform_3(%arg0: i32) -> (i32, i32, i32) {
    %c0_i32 = arith.constant 0 : i32
    %c0_i32_0 = arith.constant 0 : i32
    %c0_i32_1 = arith.constant 0 : i32
    return %arg0, %c0_i32, %c0_i32_0 : i32, i32, i32
  }
}

</mosaic_0001>

<bundles_post_ra>
// kernel: tpu_custom_call.1
= control target key start
LH: loop header
LB: loop body
LE: loop exit
PB: predicated region body
PF: predicated region fallthrough
CT: control target
= control target key end

     0   :  { %s640_s12 = smov 0   ;;  %s1222_s0 = inlined_call_operand.vmem [shape: f32[2,196,50], index: 0, kind: input, shape index: {}]   ;;  %s1223_s1 = inlined_call_operand.vmem [shape: f32[196,50], index: 1, kind: input, shape index: {}]   ;;  %s1224_s2 = inlined_call_operand.vmem [shape: f32[196,50], index: 2, kind: input, shape index: {}]   ;;  %s1225_s3 = inlined_call_operand.vmem [shape: f32[2,196,50], index: 3, kind: output, shape index: {}]  }
   0x1 LB: > { %s586_s13 = sadd.s32 4294967295, %s618_s12   ;;  %p590_p0 = scmp.ge.s32.totalorder %s618_s12, 1  ;;  %s618_s12 = sphi %s640_s12, %s13_s12  }
   0x2   : > { %p137_p1 = scmp.lt.s32.totalorder %s618_s12, 3 }
   0x4   : > { %p138_p2 = pnand %p590_p0, %p137_p1 }
   0x5   : > { %p161_p3 = scmp.lt.s32.totalorder (!%p138_p2), %s586_s13, 1 }
   0x6   : > { %141 = sbr.rel (%p138_p2) target bundleno = 582 (0x246), region = 32 }
   0xb   : > { %s1227_s13 = smov (!%p161_p3, %s586_s13), 1  ;;  %vm196_vm0 = vcmask 408576   ;;  %vm244_vm1 = vcmask 404480  }
   0xc   : > { %s595_s14 = smul.u32 200, %s1227_s13 }
   0xe   : > { %s656_s17 = scalar_lea.vmem %s1222_s0, %s595_s14  ;;  %s1021_s26 = scalar_lea.vmem %s1225_s3, %s595_s14 }
   0xf   : > { %v659_v0 = vld [vmem:[%s656_s17] sm:$0xff]  ;;  %v662_v1 = vld [vmem:[%s656_s17 + $0x8] sm:$0xff]  ;;  %v665_v2 = vld [vmem:[%s656_s17 + $0x10] sm:$0xff] }
  0x10   : > { %v668_v3 = vld [vmem:[%s656_s17 + $0x18] sm:$0xff]  ;;  %v197_v4 = vsel %vm196_vm0, %v659_v0, 0.0  ;;  %v198_v5 = vsel %vm196_vm0, %v662_v1, 0.0  ;;  %v200_v6 = vsel %vm196_vm0, %v665_v2, 0.0  ;;  %v677_v7 = vld [vmem:[%s656_s17 + $0x20] sm:$0xff]  ;;  %v682_v10 = vld [vmem:[%s656_s17 + $0x28] sm:$0xff] }
  0x11   : > { %v199_v8 = vadd.f32 %v198_v5, %v197_v4  ;;  %v202_v9 = vsel %vm196_vm0, %v668_v3, 0.0  ;;  %v204_v12 = vsel %vm196_vm0, %v677_v7, 0.0  ;;  %v687_v13 = vld [vmem:[%s656_s17 + $0x30] sm:$0xff]  ;;  %v206_v15 = vsel %vm196_vm0, %v682_v10, 0.0  ;;  %v692_v16 = vld [vmem:[%s656_s17 + $0x38] sm:$0xff]  ;;  %v697_v19 = vld [vmem:[%s656_s17 + $0x40] sm:$0xff] }
  0x12   : > { %v208_v18 = vsel %vm196_vm0, %v687_v13, 0.0  ;;  %v210_v21 = vsel %vm196_vm0, %v692_v16, 0.0  ;;  %v702_v22 = vld [vmem:[%s656_s17 + $0x48] sm:$0xff]  ;;  %v212_v24 = vsel %vm196_vm0, %v697_v19, 0.0  ;;  %v707_v25 = vld [vmem:[%s656_s17 + $0x50] sm:$0xff]  ;;  %v712_v28 = vld [vmem:[%s656_s17 + $0x58] sm:$0xff] }
  0x13   : > { %v201_v11 = vadd.f32 %v200_v6, %v199_v8  ;;  %v214_v27 = vsel %vm196_vm0, %v702_v22, 0.0  ;;  %v216_v30 = vsel %vm196_vm0, %v707_v25, 0.0  ;;  %v717_v31 = vld [vmem:[%s656_s17 + $0x60] sm:$0xff]  ;;  %v218_v33 = vsel %vm196_vm0, %v712_v28, 0.0  ;;  %v722_v34 = vld [vmem:[%s656_s17 + $0x68] sm:$0xff]  ;;  %v727_v37 = vld [vmem:[%s656_s17 + $0x70] sm:$0xff] }
  0x14   : > { %v220_v36 = vsel %vm196_vm0, %v717_v31, 0.0  ;;  %v222_v39 = vsel %vm196_vm0, %v722_v34, 0.0  ;;  %v732_v40 = vld [vmem:[%s656_s17 + $0x78] sm:$0xff]  ;;  %v224_v42 = vsel %vm196_vm0, %v727_v37, 0.0  ;;  %v737_v43 = vld [vmem:[%s656_s17 + $0x80] sm:$0xff]  ;;  %v742_v46 = vld [vmem:[%s656_s17 + $0x88] sm:$0xff] }
  0x15   : > { %v203_v14 = vadd.f32 %v202_v9, %v201_v11  ;;  %v226_v45 = vsel %vm196_vm0, %v732_v40, 0.0  ;;  %v228_v48 = vsel %vm196_vm0, %v737_v43, 0.0  ;;  %v747_v49 = vld [vmem:[%s656_s17 + $0x90] sm:$0xff]  ;;  %v230_v51 = vsel %vm196_vm0, %v742_v46, 0.0  ;;  %v752_v52 = vld [vmem:[%s656_s17 + $0x98] sm:$0xff]  ;;  %v757_v55 = vld [vmem:[%s656_s17 + $0xa0] sm:$0xff] }
  0x16   : > { %v232_v54 = vsel %vm196_vm0, %v747_v49, 0.0  ;;  %v234_v57 = vsel %vm196_vm0, %v752_v52, 0.0  ;;  %v762_v58 = vld [vmem:[%s656_s17 + $0xa8] sm:$0xff]  ;;  %v236_v60 = vsel %vm196_vm0, %v757_v55, 0.0  ;;  %v767_v61 = vld [vmem:[%s656_s17 + $0xb0] sm:$0xff]  ;;  %v772_v4 = vld [vmem:[%s656_s17 + $0xb8] sm:$0xff] }
  0x17   : > { %v205_v17 = vadd.f32 %v204_v12, %v203_v14  ;;  %v238_v63 = vsel %vm196_vm0, %v762_v58, 0.0  ;;  %v240_v6 = vsel %vm196_vm0, %v767_v61, 0.0  ;;  %v777_v8 = vld [vmem:[%s656_s17 + $0xc0] sm:$0xf]  ;;  %v242_v11 = vsel %vm196_vm0, %v772_v4, 0.0 }
  0x18   : > { %v245_v14 = vsel %vm244_vm1, %v777_v8, 0.0 }
  0x19   : > { %v207_v20 = vadd.f32 %v206_v15, %v205_v17 }
  0x1b   : > { %v209_v23 = vadd.f32 %v208_v18, %v207_v20 }
  0x1d   : > { %v211_v26 = vadd.f32 %v210_v21, %v209_v23 }
  0x1f   : > { %v213_v29 = vadd.f32 %v212_v24, %v211_v26 }
  0x21   : > { %v215_v32 = vadd.f32 %v214_v27, %v213_v29 }
  0x23   : > { %v217_v35 = vadd.f32 %v216_v30, %v215_v32 }
  0x25   : > { %v219_v38 = vadd.f32 %v218_v33, %v217_v35 }
  0x27   : > { %v221_v41 = vadd.f32 %v220_v36, %v219_v38 }
  0x29   : > { %v223_v44 = vadd.f32 %v222_v39, %v221_v41 }
  0x2b   : > { %v225_v47 = vadd.f32 %v224_v42, %v223_v44 }
  0x2d   : > { %v227_v50 = vadd.f32 %v226_v45, %v225_v47 }
  0x2f   : > { %v229_v53 = vadd.f32 %v228_v48, %v227_v50 }
  0x31   : > { %v231_v56 = vadd.f32 %v230_v51, %v229_v53 }
  0x33   : > { %v233_v59 = vadd.f32 %v232_v54, %v231_v56 }
  0x35   : > { %v235_v62 = vadd.f32 %v234_v57, %v233_v59 }
  0x37   : > { %v237_v5 = vadd.f32 %v236_v60, %v235_v62 }
  0x39   : > { %v239_v9 = vadd.f32 %v238_v63, %v237_v5 }
  0x3b   : > { %v241_v12 = vadd.f32 %v240_v6, %v239_v9 }
  0x3d   : > { %v243_v15 = vadd.f32 %v242_v11, %v241_v12 }
  0x3f   : > { %v246_v17 = vadd.f32 %v245_v14, %v243_v15 }
  0x41   : > { %247 = vadd.xlane.f32.xlu0 %v246_v17 }
  0xb4   : > { %v248_v18 = vpop.xlane.xlu0 %247 }
  0xb5   : > { %v249_v20 = vrot.slane %v248_v18, 4 }
  0xb7   : > { %v250_v21 = vadd.f32 %v249_v20, %v248_v18 }
  0xb9   : > { %v251_v23 = vrot.slane %v250_v21, 2 }
  0xbb   : > { %v252_v24 = vadd.f32 %v251_v23, %v250_v21 }
  0xbd   : > { %v253_v26 = vrot.slane %v252_v24, 1 }
  0xbf   : > { %v254_v27 = vadd.f32 %v253_v26, %v252_v24 }
  0xc1   : > { %596 = vpush %v254_v27 }
  0xf2   : > { %s597_s18 = spop %596 }
  0xf3   : > { %s256_s19 = smul.f32 0.000102040816, %s597_s18 }
  0xf5   : > { %v783_v29 = vstv %s256_s19 }
  0xf6   : > { %v787_v30 = vsub.f32 %v659_v0, %v783_v29  ;;  %v791_v32 = vsub.f32 %v662_v1, %v783_v29  ;;  %v795_v33 = vsub.f32 %v665_v2, %v783_v29  ;;  %v799_v35 = vsub.f32 %v668_v3, %v783_v29 }
  0xf7   : > { %v807_v0 = vsub.f32 %v677_v7, %v783_v29  ;;  %v813_v2 = vsub.f32 %v682_v10, %v783_v29  ;;  %v821_v44 = vsub.f32 %v687_v13, %v783_v29  ;;  %v828_v10 = vsub.f32 %v692_v16, %v783_v29 }
  0xf8   : > { %v283_v36 = vmul.f32 %v787_v30, %v787_v30  ;;  %v284_v38 = vmul.f32 %v791_v32, %v791_v32  ;;  %v285_v1 = vmul.f32 %v795_v33, %v795_v33  ;;  %v286_v3 = vmul.f32 %v799_v35, %v799_v35 }
  0xf9   : > { %v287_v7 = vmul.f32 %v807_v0, %v807_v0  ;;  %v288_v48 = vmul.f32 %v813_v2, %v813_v2  ;;  %v835_v13 = vsub.f32 %v697_v19, %v783_v29  ;;  %v289_v53 = vmul.f32 %v821_v44, %v821_v44 }
  0xfa   : > { %v308_v39 = vsel %vm196_vm0, %v283_v36, 0.0  ;;  %v309_v41 = vsel %vm196_vm0, %v284_v38, 0.0  ;;  %v311_v45 = vsel %vm196_vm0, %v285_v1, 0.0  ;;  %v313_v50 = vsel %vm196_vm0, %v286_v3, 0.0 }
  0xfb   : > { %v310_v42 = vadd.f32 %v309_v41, %v308_v39  ;;  %v315_v54 = vsel %vm196_vm0, %v287_v7, 0.0  ;;  %v842_v16 = vsub.f32 %v702_v22, %v783_v29  ;;  %v290_v57 = vmul.f32 %v828_v10, %v828_v10 }
  0xfc   : > { %v317_v59 = vsel %vm196_vm0, %v288_v48, 0.0  ;;  %v849_v19 = vsub.f32 %v707_v25, %v783_v29  ;;  %v291_v62 = vmul.f32 %v835_v13, %v835_v13  ;;  %v319_v63 = vsel %vm196_vm0, %v289_v53, 0.0 }
  0xfd   : > { %v312_v47 = vadd.f32 %v311_v45, %v310_v42  ;;  %v856_v22 = vsub.f32 %v712_v28, %v783_v29  ;;  %v292_v6 = vmul.f32 %v842_v16, %v842_v16  ;;  %v321_v9 = vsel %vm196_vm0, %v290_v57, 0.0 }
  0xfe   : > { %v863_v25 = vsub.f32 %v717_v31, %v783_v29  ;;  %v293_v12 = vmul.f32 %v849_v19, %v849_v19  ;;  %v323_v14 = vsel %vm196_vm0, %v291_v62, 0.0  ;;  %v870_v28 = vsub.f32 %v722_v34, %v783_v29 }
  0xff   : > { %v314_v51 = vadd.f32 %v313_v50, %v312_v47  ;;  %v294_v17 = vmul.f32 %v856_v22, %v856_v22  ;;  %v325_v18 = vsel %vm196_vm0, %v292_v6, 0.0  ;;  %v877_v31 = vsub.f32 %v727_v37, %v783_v29 }
 0x100   : > { %v295_v21 = vmul.f32 %v863_v25, %v863_v25  ;;  %v327_v23 = vsel %vm196_vm0, %v293_v12, 0.0  ;;  %v884_v34 = vsub.f32 %v732_v40, %v783_v29  ;;  %v296_v26 = vmul.f32 %v870_v28, %v870_v28 }
 0x101   : > { %v316_v56 = vadd.f32 %v315_v54, %v314_v51  ;;  %v329_v27 = vsel %vm196_vm0, %v294_v17, 0.0  ;;  %v891_v37 = vsub.f32 %v737_v43, %v783_v29  ;;  %v297_v38 = vmul.f32 %v877_v31, %v877_v31 }
 0x102   : > { %v331_v1 = vsel %vm196_vm0, %v295_v21, 0.0  ;;  %v898_v40 = vsub.f32 %v742_v46, %v783_v29  ;;  %v298_v39 = vmul.f32 %v884_v34, %v884_v34  ;;  %v333_v41 = vsel %vm196_vm0, %v296_v26, 0.0 }
 0x103   : > { %v318_v60 = vadd.f32 %v317_v59, %v316_v56  ;;  %v905_v43 = vsub.f32 %v747_v49, %v783_v29  ;;  %v299_v7 = vmul.f32 %v891_v37, %v891_v37  ;;  %v335_v45 = vsel %vm196_vm0, %v297_v38, 0.0 }
 0x104   : > { %v912_v46 = vsub.f32 %v752_v52, %v783_v29  ;;  %v300_v48 = vmul.f32 %v898_v40, %v898_v40  ;;  %v337_v50 = vsel %vm196_vm0, %v298_v39, 0.0  ;;  %v919_v49 = vsub.f32 %v757_v55, %v783_v29 }
 0x105   : > { %v320_v5 = vadd.f32 %v319_v63, %v318_v60  ;;  %v301_v53 = vmul.f32 %v905_v43, %v905_v43  ;;  %v339_v54 = vsel %vm196_vm0, %v299_v7, 0.0  ;;  %v926_v52 = vsub.f32 %v762_v58, %v783_v29 }
 0x106   : > { %v302_v57 = vmul.f32 %v912_v46, %v912_v46  ;;  %v341_v59 = vsel %vm196_vm0, %v300_v48, 0.0  ;;  %v933_v55 = vsub.f32 %v767_v61, %v783_v29  ;;  %v303_v62 = vmul.f32 %v919_v49, %v919_v49 }
 0x107   : > { %v322_v11 = vadd.f32 %v321_v9, %v320_v5  ;;  %v343_v63 = vsel %vm196_vm0, %v301_v53, 0.0  ;;  %v940_v58 = vsub.f32 %v772_v4, %v783_v29  ;;  %v304_v6 = vmul.f32 %v926_v52, %v926_v52 }
 0x108   : > { %v345_v9 = vsel %vm196_vm0, %v302_v57, 0.0  ;;  %v947_v61 = vsub.f32 %v777_v8, %v783_v29  ;;  %v305_v12 = vmul.f32 %v933_v55, %v933_v55 }
 0x109   : > { %v324_v15 = vadd.f32 %v323_v14, %v322_v11  ;;  %v347_v14 = vsel %vm196_vm0, %v303_v62, 0.0  ;;  %v306_v4 = vmul.f32 %v940_v58, %v940_v58  ;;  %v349_v17 = vsel %vm196_vm0, %v304_v6, 0.0  ;;  %v406_v62 = vld [vmem:[%s1223_s1] sm:$0xff] }
 0x10a   : > { %v351_v21 = vsel %vm196_vm0, %v305_v12, 0.0 }
 0x10b   : > { %v326_v20 = vadd.f32 %v325_v18, %v324_v15  ;;  %v353_v8 = vsel %vm196_vm0, %v306_v4, 0.0  ;;  %v456_v4 = vld [vmem:[%s1224_s2] sm:$0xff] }
 0x10d   : > { %v328_v24 = vadd.f32 %v327_v23, %v326_v20  ;;  %v307_v20 = vmul.f32 %v947_v61, %v947_v61 }
 0x10f   : > { %v330_v36 = vadd.f32 %v329_v27, %v328_v24  ;;  %v355_v24 = vsel %vm244_vm1, %v307_v20, 0.0  ;;  %v458_v20 = vld [vmem:[%s1224_s2 + $0x10] sm:$0xff] }
 0x111   : > { %v332_v3 = vadd.f32 %v331_v1, %v330_v36 }
 0x113   : > { %v334_v42 = vadd.f32 %v333_v41, %v332_v3 }
 0x115   : > { %v336_v47 = vadd.f32 %v335_v45, %v334_v42 }
 0x117   : > { %v338_v51 = vadd.f32 %v337_v50, %v336_v47 }
 0x119   : > { %v340_v56 = vadd.f32 %v339_v54, %v338_v51 }
 0x11b   : > { %v342_v60 = vadd.f32 %v341_v59, %v340_v56 }
 0x11d   : > { %v344_v5 = vadd.f32 %v343_v63, %v342_v60  ;;  %v407_v63 = vld [vmem:[%s1223_s1 + $0x8] sm:$0xff] }
 0x11f   : > { %v346_v11 = vadd.f32 %v345_v9, %v344_v5  ;;  %v410_v5 = vld [vmem:[%s1223_s1 + $0x20] sm:$0xff] }
 0x121   : > { %v348_v15 = vadd.f32 %v347_v14, %v346_v11 }
 0x123   : > { %v350_v18 = vadd.f32 %v349_v17, %v348_v15 }
 0x125   : > { %v352_v23 = vadd.f32 %v351_v21, %v350_v18  ;;  %v459_v21 = vld [vmem:[%s1224_s2 + $0x18] sm:$0xff] }
 0x127   : > { %v354_v29 = vadd.f32 %v353_v8, %v352_v23  ;;  %v414_v23 = vld [vmem:[%s1223_s1 + $0x40] sm:$0xff] }
 0x129   : > { %v356_v26 = vadd.f32 %v355_v24, %v354_v29  ;;  %v460_v29 = vld [vmem:[%s1224_s2 + $0x20] sm:$0xff] }
 0x12b   : > { %357 = vadd.xlane.f32.xlu0 %v356_v26  ;;  %v415_v26 = vld [vmem:[%s1223_s1 + $0x48] sm:$0xff] }
 0x19e   : > { %v358_v27 = vpop.xlane.xlu0 %357 }
 0x19f   : > { %v359_v36 = vrot.slane %v358_v27, 4 }
 0x1a1   : > { %v360_v38 = vadd.f32 %v359_v36, %v358_v27 }
 0x1a3   : > { %v361_v1 = vrot.slane %v360_v38, 2 }
 0x1a5   : > { %v362_v3 = vadd.f32 %v361_v1, %v360_v38 }
 0x1a7   : > { %v363_v39 = vrot.slane %v362_v3, 1 }
 0x1a9   : > { %v364_v41 = vadd.f32 %v363_v39, %v362_v3  ;;  %v416_v3 = vld [vmem:[%s1223_s1 + $0x50] sm:$0xff] }
 0x1aa   : > { %v462_v39 = vld [vmem:[%s1224_s2 + $0x30] sm:$0xff] }
 0x1ab   : > { %598 = vpush %v364_v41 }
 0x1dc   : > { %s599_s20 = spop %598 }
 0x1dd   : > { %s366_s21 = smul.f32 0.000102040816, %s599_s20 }
 0x1df   : > { %s367_s22 = sadd.f32 1e-05, %s366_s21 }
 0x1e1   : > { %v368_v42 = vstv %s367_s22 }
 0x1e2   : > { %610 = vrsqrt.f32 %v368_v42  ;;  %vm375_vm3 = vweird.f32 %v368_v42 }
 0x1e8   : > { %v611_v7 = vpop.eup %610 }
 0x1e9   : > { %v370_v45 = vmul.f32 %v611_v7, %v368_v42  ;;  %vm376_vm2 = vweird.f32 %v611_v7 }
 0x1ea   : > { %vm377_vm4 = vmor %vm375_vm3, %vm376_vm2 }
 0x1eb   : > { %v371_v47 = vmul.f32 %v611_v7, %v370_v45  ;;  %v417_v45 = vld [vmem:[%s1223_s1 + $0x58] sm:$0xff] }
 0x1ed   : > { %v372_v48 = vmul.f32 0.5, %v371_v47  ;;  %v463_v47 = vld [vmem:[%s1224_s2 + $0x38] sm:$0xff] }
 0x1ef   : > { %v373_v50 = vsub.f32 1.5, %v372_v48 }
 0x1f1   : > { %v374_v51 = vmul.f32 %v611_v7, %v373_v50 }
 0x1f3   : > { %v378_v53 = vsel %vm377_vm4, %v611_v7, %v374_v51 }
 0x1f4   : > { %600 = vpush %v378_v53  ;;  %v464_v53 = vld [vmem:[%s1224_s2 + $0x40] sm:$0xff] }
 0x225   : > { %s601_s23 = spop %600 }
 0x226   : > { %v960_v54 = vstv %s601_s23 }
 0x227   : > { %v381_v56 = vmul.f32 %v960_v54, %v787_v30  ;;  %v382_v57 = vmul.f32 %v960_v54, %v791_v32  ;;  %v383_v59 = vmul.f32 %v960_v54, %v795_v33  ;;  %v384_v60 = vmul.f32 %v960_v54, %v799_v35  ;;  %v408_v32 = vld [vmem:[%s1223_s1 + $0x10] sm:$0xff]  ;;  %v409_v33 = vld [vmem:[%s1223_s1 + $0x18] sm:$0xff] }
 0x228   : > { %v385_v30 = vmul.f32 %v960_v54, %v807_v0  ;;  %v386_v35 = vmul.f32 %v960_v54, %v813_v2  ;;  %v387_v6 = vmul.f32 %v960_v54, %v821_v44  ;;  %v411_v0 = vld [vmem:[%s1223_s1 + $0x28] sm:$0xff]  ;;  %v388_v12 = vmul.f32 %v960_v54, %v828_v10  ;;  %v412_v2 = vld [vmem:[%s1223_s1 + $0x30] sm:$0xff]  ;;  %v413_v10 = vld [vmem:[%s1223_s1 + $0x38] sm:$0xff] }
 0x229   : > { %v431_v9 = vmul.f32 %v406_v62, %v381_v56  ;;  %v432_v11 = vmul.f32 %v407_v63, %v382_v57  ;;  %v433_v14 = vmul.f32 %v408_v32, %v383_v59  ;;  %v434_v15 = vmul.f32 %v409_v33, %v384_v60  ;;  %v457_v44 = vld [vmem:[%s1224_s2 + $0x8] sm:$0xff]  ;;  %v466_v32 = vld [vmem:[%s1224_s2 + $0x50] sm:$0xff] }
 0x22a   : > { %v389_v17 = vmul.f32 %v960_v54, %v835_v13  ;;  %v435_v18 = vmul.f32 %v410_v5, %v385_v30  ;;  %v390_v13 = vmul.f32 %v960_v54, %v842_v16  ;;  %v436_v8 = vmul.f32 %v411_v0, %v386_v35  ;;  %v461_v16 = vld [vmem:[%s1224_s2 + $0x28] sm:$0xff] }
 0x22b   : > { %v391_v24 = vmul.f32 %v960_v54, %v849_v19  ;;  %v437_v27 = vmul.f32 %v412_v2, %v387_v6  ;;  %v481_v36 = vadd.f32 %v456_v4, %v431_v9  ;;  %v482_v38 = vadd.f32 %v457_v44, %v432_v11  ;;  %v465_v60 = vld [vmem:[%s1224_s2 + $0x48] sm:$0xff]  ;;  %v467_v6 = vld [vmem:[%s1224_s2 + $0x58] sm:$0xff] }
 0x22c   : > { %v392_v1 = vmul.f32 %v960_v54, %v856_v22  ;;  %v438_v19 = vmul.f32 %v413_v10, %v388_v12  ;;  %v483_v41 = vadd.f32 %v458_v20, %v433_v14  ;;  %v484_v42 = vadd.f32 %v459_v21, %v434_v15  ;;  %v468_v12 = vld [vmem:[%s1224_s2 + $0x60] sm:$0xff]  ;;  %v469_v4 = vld [vmem:[%s1224_s2 + $0x68] sm:$0xff] }
 0x22d   : > { %v393_v7 = vmul.f32 %v960_v54, %v863_v25  ;;  %v439_v22 = vmul.f32 %v414_v23, %v389_v17  ;;  %v485_v48 = vadd.f32 %v460_v29, %v435_v18  ;;  %506 = vst.msk [vmem:[%s1021_s26] sm:$0xff] %vm196_vm0, %v481_v36  ;;  %v394_v50 = vmul.f32 %v960_v54, %v870_v28  ;;  %v418_v25 = vld [vmem:[%s1223_s1 + $0x60] sm:$0xff]  ;;  %v419_v28 = vld [vmem:[%s1223_s1 + $0x68] sm:$0xff]  ;;  %v470_v18 = vld [vmem:[%s1224_s2 + $0x70] sm:$0xff] }
 0x22e   : > { %v440_v51 = vmul.f32 %v415_v26, %v390_v13  ;;  %v486_v56 = vadd.f32 %v461_v16, %v436_v8  ;;  %507 = vst.msk [vmem:[%s1021_s26 + $0x8] sm:$0xff] %vm196_vm0, %v482_v38  ;;  %v395_v57 = vmul.f32 %v960_v54, %v877_v31  ;;  %v441_v59 = vmul.f32 %v416_v3, %v391_v24  ;;  %v420_v31 = vld [vmem:[%s1223_s1 + $0x70] sm:$0xff]  ;;  %v471_v23 = vld [vmem:[%s1224_s2 + $0x78] sm:$0xff]  ;;  %v472_v26 = vld [vmem:[%s1224_s2 + $0x80] sm:$0xff] }
 0x22f   : > { %v487_v62 = vadd.f32 %v462_v39, %v437_v27  ;;  %508 = vst.msk [vmem:[%s1021_s26 + $0x10] sm:$0xff] %vm196_vm0, %v483_v41  ;;  %v396_v63 = vmul.f32 %v960_v54, %v884_v34  ;;  %v442_v30 = vmul.f32 %v417_v45, %v392_v1  ;;  %v488_v33 = vadd.f32 %v463_v47, %v438_v19  ;;  %v421_v34 = vld [vmem:[%s1223_s1 + $0x78] sm:$0xff]  ;;  %v473_v38 = vld [vmem:[%s1224_s2 + $0x88] sm:$0xff]  ;;  %v474_v39 = vld [vmem:[%s1224_s2 + $0x90] sm:$0xff] }
 0x230   : > { %509 = vst.msk [vmem:[%s1021_s26 + $0x18] sm:$0xff] %vm196_vm0, %v484_v42  ;;  %v397_v35 = vmul.f32 %v960_v54, %v891_v37  ;;  %v443_v5 = vmul.f32 %v418_v25, %v393_v7  ;;  %v489_v0 = vadd.f32 %v464_v53, %v439_v22  ;;  %v398_v9 = vmul.f32 %v960_v54, %v898_v40  ;;  %v422_v37 = vld [vmem:[%s1223_s1 + $0x80] sm:$0xff]  ;;  %v423_v40 = vld [vmem:[%s1223_s1 + $0x88] sm:$0xff]  ;;  %v475_v45 = vld [vmem:[%s1224_s2 + $0x98] sm:$0xff] }
 0x231   : > { %510 = vst.msk [vmem:[%s1021_s26 + $0x20] sm:$0xff] %vm196_vm0, %v485_v48  ;;  %v444_v11 = vmul.f32 %v419_v28, %v394_v50  ;;  %v490_v2 = vadd.f32 %v465_v60, %v440_v51  ;;  %v399_v14 = vmul.f32 %v960_v54, %v905_v43  ;;  %v445_v15 = vmul.f32 %v420_v31, %v395_v57  ;;  %v424_v43 = vld [vmem:[%s1223_s1 + $0x90] sm:$0xff]  ;;  %v430_v47 = vld [vmem:[%s1223_s1 + $0xc0] sm:$0xf]  ;;  %v477_v25 = vld [vmem:[%s1224_s2 + $0xa8] sm:$0xff] }
 0x232   : > { %511 = vst.msk [vmem:[%s1021_s26 + $0x28] sm:$0xff] %vm196_vm0, %v486_v56  ;;  %v491_v44 = vadd.f32 %v466_v32, %v441_v59  ;;  %v400_v17 = vmul.f32 %v960_v54, %v912_v46  ;;  %v446_v10 = vmul.f32 %v421_v34, %v396_v63  ;;  %v492_v20 = vadd.f32 %v467_v6, %v442_v30  ;;  %v425_v46 = vld [vmem:[%s1223_s1 + $0x98] sm:$0xff]  ;;  %v478_v56 = vld [vmem:[%s1224_s2 + $0xb0] sm:$0xff] }
 0x233   : > { %512 = vst.msk [vmem:[%s1021_s26 + $0x30] sm:$0xff] %vm196_vm0, %v487_v62  ;;  %v401_v21 = vmul.f32 %v960_v54, %v919_v49  ;;  %v447_v13 = vmul.f32 %v422_v37, %v397_v35  ;;  %v493_v8 = vadd.f32 %v468_v12, %v443_v5  ;;  %v402_v29 = vmul.f32 %v960_v54, %v926_v52  ;;  %v426_v49 = vld [vmem:[%s1223_s1 + $0xa0] sm:$0xff]  ;;  %v427_v52 = vld [vmem:[%s1223_s1 + $0xa8] sm:$0xff]  ;;  %v479_v59 = vld [vmem:[%s1224_s2 + $0xb8] sm:$0xff] }
 0x234   : > { %513 = vst.msk [vmem:[%s1021_s26 + $0x38] sm:$0xff] %vm196_vm0, %v488_v33  ;;  %v448_v24 = vmul.f32 %v423_v40, %v398_v9  ;;  %v494_v27 = vadd.f32 %v469_v4, %v444_v11  ;;  %v403_v16 = vmul.f32 %v960_v54, %v933_v55  ;;  %v449_v36 = vmul.f32 %v424_v43, %v399_v14  ;;  %v428_v55 = vld [vmem:[%s1223_s1 + $0xb0] sm:$0xff]  ;;  %v480_v62 = vld [vmem:[%s1224_s2 + $0xc0] sm:$0xf] }
 0x235   : > { %514 = vst.msk [vmem:[%s1021_s26 + $0x40] sm:$0xff] %vm196_vm0, %v489_v0  ;;  %v495_v1 = vadd.f32 %v470_v18, %v445_v15  ;;  %v404_v3 = vmul.f32 %v960_v54, %v940_v58  ;;  %v450_v19 = vmul.f32 %v425_v46, %v400_v17  ;;  %v496_v41 = vadd.f32 %v471_v23, %v446_v10  ;;  %v429_v58 = vld [vmem:[%s1223_s1 + $0xb8] sm:$0xff] }
 0x236   : > { %515 = vst.msk [vmem:[%s1021_s26 + $0x48] sm:$0xff] %vm196_vm0, %v490_v2  ;;  %v405_v42 = vmul.f32 %v960_v54, %v947_v61  ;;  %v451_v7 = vmul.f32 %v426_v49, %v401_v21  ;;  %v497_v22 = vadd.f32 %v472_v26, %v447_v13  ;;  %v452_v48 = vmul.f32 %v427_v52, %v402_v29  ;;  %v476_v61 = vld [vmem:[%s1224_s2 + $0xa0] sm:$0xff] }
 0x237   : > { %516 = vst.msk [vmem:[%s1021_s26 + $0x50] sm:$0xff] %vm196_vm0, %v491_v44  ;;  %v498_v54 = vadd.f32 %v473_v38, %v448_v24  ;;  %v453_v50 = vmul.f32 %v428_v55, %v403_v16  ;;  %v499_v51 = vadd.f32 %v474_v39, %v449_v36  ;;  %v454_v53 = vmul.f32 %v429_v58, %v404_v3 }
 0x238   : > { %517 = vst.msk [vmem:[%s1021_s26 + $0x58] sm:$0xff] %vm196_vm0, %v492_v20  ;;  %v500_v57 = vadd.f32 %v475_v45, %v450_v19  ;;  %v455_v28 = vmul.f32 %v430_v47, %v405_v42  ;;  %v501_v60 = vadd.f32 %v476_v61, %v451_v7  ;;  %v502_v63 = vadd.f32 %v477_v25, %v452_v48 }
 0x239   : > { %518 = vst.msk [vmem:[%s1021_s26 + $0x60] sm:$0xff] %vm196_vm0, %v493_v8  ;;  %v503_v31 = vadd.f32 %v478_v56, %v453_v50  ;;  %v504_v30 = vadd.f32 %v479_v59, %v454_v53 }
 0x23a   : > { %519 = vst.msk [vmem:[%s1021_s26 + $0x68] sm:$0xff] %vm196_vm0, %v494_v27  ;;  %v505_v32 = vadd.f32 %v480_v62, %v455_v28 }
 0x23b   : > { %520 = vst.msk [vmem:[%s1021_s26 + $0x70] sm:$0xff] %vm196_vm0, %v495_v1 }
 0x23c   : > { %521 = vst.msk [vmem:[%s1021_s26 + $0x78] sm:$0xff] %vm196_vm0, %v496_v41 }
 0x23d   : > { %522 = vst.msk [vmem:[%s1021_s26 + $0x80] sm:$0xff] %vm196_vm0, %v497_v22 }
 0x23e   : > { %523 = vst.msk [vmem:[%s1021_s26 + $0x88] sm:$0xff] %vm196_vm0, %v498_v54 }
 0x23f   : > { %524 = vst.msk [vmem:[%s1021_s26 + $0x90] sm:$0xff] %vm196_vm0, %v499_v51 }
 0x240   : > { %525 = vst.msk [vmem:[%s1021_s26 + $0x98] sm:$0xff] %vm196_vm0, %v500_v57 }
 0x241   : > { %526 = vst.msk [vmem:[%s1021_s26 + $0xa0] sm:$0xff] %vm196_vm0, %v501_v60 }
 0x242   : > { %527 = vst.msk [vmem:[%s1021_s26 + $0xa8] sm:$0xff] %vm196_vm0, %v502_v63 }
 0x243   : > { %528 = vst.msk [vmem:[%s1021_s26 + $0xb0] sm:$0xff] %vm196_vm0, %v503_v31 }
 0x244   : > { %529 = vst.msk [vmem:[%s1021_s26 + $0xb8] sm:$0xff] %vm196_vm0, %v504_v30 }
 0x245   : > { %530 = vst.msk [vmem:[%s1021_s26 + $0xc0] sm:$0xf] %vm244_vm1, %v505_v32 }
 0x246 PF: > { %s13_s12 = sadd.s32 1, %s618_s12  }
 0x247   : > { %p10_p4 = scmp.ge.s32.totalorder %s13_s12, 4  }
 0x249   :  { %12 = sbr.rel (!%p10_p4) target bundleno = 1 (0x1), region = 62 }

</bundles_post_ra>
